<compile_context>
chip_gen: v7x
topology: tpu7x:2x2x1
jax: 0.10.0
libtpu: 0.0.40
codegen_flags: <defaults>
</compile_context>

<pallas_src>
import functools

import jax
import jax.numpy as jnp
from jax.experimental import pallas as pl
from jax.experimental.pallas import tpu as pltpu

EPS = 1e-5


def basic_block_kernel(x_ref, w1_ref, b1_ref, g1_ref, be1_ref,
                       w2_ref, b2_ref, g2_ref, be2_ref, o_ref,
                       *, seg_len, n_valid):
    # x_ref  : (Cp, NLp)   batch folded into lanes (column j = (n=j//L, l=j%L))
    # w*_ref : (Cp, 3*Cp)  tap-fused conv weights [tap0 | tap1 | tap2]
    # b*/g*/be*_ref : (Cp, 1)
    # o_ref  : (Cp, NLp)
    Cp, NLp = x_ref.shape
    needs_valid_mask = n_valid < NLp  # static (trace-time) decision

    lane = jax.lax.broadcasted_iota(jnp.int32, (1, NLp), 1)
    pos = lane % seg_len                       # position within a batch segment
    is_first = pos != 0
    is_not_last = pos != seg_len - 1
    if needs_valid_mask:
        in_range = lane < n_valid
        valid_f = in_range.astype(jnp.float32)                        # BN mask
        prev_m = jnp.logical_and(is_first, in_range).astype(jnp.float32)
        next_m = jnp.logical_and(is_not_last, in_range).astype(jnp.float32)
    else:
        valid_f = None
        prev_m = is_first.astype(jnp.float32)
        next_m = is_not_last.astype(jnp.float32)
    inv_count = 1.0 / float(n_valid)

    x = x_ref[...]

    def conv(h, w_ref, b_ref):
        # Shifted operands via XLU rolls (free slot) + edge masks, stacked along
        # sublanes, then a single fused-tap MXU matmul for the whole batch.
        h_prev = pltpu.roll(h, shift=1, axis=1) * prev_m          # h[:, j-1]
        h_next = pltpu.roll(h, shift=NLp - 1, axis=1) * next_m    # h[:, j+1]
        cols = jnp.concatenate([h_prev, h, h_next], axis=0)       # (3*Cp, NLp)
        return jnp.dot(w_ref[...], cols,
                       preferred_element_type=jnp.float32) + b_ref[...]

    def batchnorm(h, g_ref, be_ref):
        # training-mode BN over (N, L) per channel, single reduction pass
        hm = h * valid_f if needs_valid_mask else h
        s = jnp.sum(hm, axis=1, keepdims=True)                    # (Cp, 1)
        ss = jnp.sum(hm * hm, axis=1, keepdims=True)              # (Cp, 1)
        mean = s * inv_count
        var = ss * inv_count - mean * mean
        scale = jax.lax.rsqrt(var + EPS) * g_ref[...]             # (Cp, 1)
        shift = be_ref[...] - mean * scale                        # (Cp, 1)
        return h * scale + shift                                  # one FMA / element

    # ---- conv1 + bn1 + relu ----
    h1 = jnp.maximum(batchnorm(conv(x, w1_ref, b1_ref), g1_ref, be1_ref), 0.0)
    # ---- conv2 + bn2 + residual + relu ----
    h2 = batchnorm(conv(h1, w2_ref, b2_ref), g2_ref, be2_ref)
    o_ref[...] = jnp.maximum(h2 + x, 0.0)


def basic_block(x, params):
    """x: (N, C, L) float32; params: dict of conv/bn parameters (PyTorch layout)."""
    N, C, L = x.shape
    Cp = ((C + 7) // 8) * 8            # sublane-aligned channels
    NL = N * L
    NLp = ((NL + 127) // 128) * 128    # lane-dense, 128-aligned length

    # fold the batch into lanes and zero-pad to the tile-aligned slab
    x2 = jnp.transpose(x, (1, 0, 2)).reshape(C, NL).astype(jnp.float32)
    xpad = jnp.zeros((Cp, NLp), jnp.float32).at[:C, :NL].set(x2)

    def pack_w(w):  # w: (Cout, Cin, 3) torch Conv1d layout -> (Cp, 3*Cp) fused taps
        wp = jnp.zeros((Cp, 3 * Cp), jnp.float32)
        for k in range(3):
            wp = wp.at[:C, k * Cp:k * Cp + C].set(w[:, :, k].astype(jnp.float32))
        return wp

    def col(v):
        return jnp.zeros((Cp, 1), jnp.float32).at[:C, 0].set(v.astype(jnp.float32))

    kernel = functools.partial(basic_block_kernel, seg_len=L, n_valid=NL)
    vmem = pl.BlockSpec(memory_space=pltpu.MemorySpace.VMEM)
    out = pl.pallas_call(
        kernel,
        out_shape=jax.ShapeDtypeStruct((Cp, NLp), jnp.float32),
        in_specs=[vmem] * 9,
        out_specs=vmem,
        compiler_params=pltpu.CompilerParams(vmem_limit_bytes=64 << 20),
    )(xpad,
      pack_w(params["w1"]), col(params["b1"]), col(params["g1"]), col(params["be1"]),
      pack_w(params["w2"]), col(params["b2"]), col(params["g2"]), col(params["be2"]))

    # (Cp, NLp) -> (N, C, L)
    return out[:C, :NL].reshape(C, N, L).transpose(1, 0, 2)


def basic_block_reference(x, params):
    """Pure-JAX reference matching the PyTorch forward (training-mode BN)."""
    def conv1d(x, w, b):
        y = jax.lax.conv_general_dilated(
            x, w, window_strides=(1,), padding=((1, 1),),
            dimension_numbers=("NCH", "OIH", "NCH"))
        return y + b[None, :, None]

    def bn(x, g, be):
        mean = x.mean(axis=(0, 2), keepdims=True)
        var = ((x - mean) ** 2).mean(axis=(0, 2), keepdims=True)
        return (x - mean) / jnp.sqrt(var + EPS) * g[None, :, None] + be[None, :, None]

    h = jax.nn.relu(bn(conv1d(x, params["w1"], params["b1"]), params["g1"], params["be1"]))
    out = bn(conv1d(h, params["w2"], params["b2"]), params["g2"], params["be2"]) + x
    return jax.nn.relu(out)


if __name__ == "__main__":
    # conv1_filters == conv2_filters == C (required for the module to be runnable)
    N, C, L = 2, 8, 16
    key = jax.random.PRNGKey(0)
    ks = jax.random.split(key, 9)

    params = {
        "w1": 0.1 * jax.random.normal(ks[0], (C, C, 3), jnp.float32),
        "b1": 0.1 * jax.random.normal(ks[1], (C,), jnp.float32),
        "g1": 1.0 + 0.1 * jax.random.normal(ks[2], (C,), jnp.float32),
        "be1": 0.1 * jax.random.normal(ks[3], (C,), jnp.float32),
        "w2": 0.1 * jax.random.normal(ks[4], (C, C, 3), jnp.float32),
        "b2": 0.1 * jax.random.normal(ks[5], (C,), jnp.float32),
        "g2": 1.0 + 0.1 * jax.random.normal(ks[6], (C,), jnp.float32),
        "be2": 0.1 * jax.random.normal(ks[7], (C,), jnp.float32),
    }
    x = jax.random.normal(ks[8], (N, C, L), jnp.float32)

    out = basic_block(x, params)
    out = jax.block_until_ready(out)

    ref = basic_block_reference(x, params)
    assert out.shape == (N, C, L)
    assert jnp.allclose(out, ref, atol=1e-4, rtol=1e-4), (
        f"max abs err = {jnp.max(jnp.abs(out - ref))}")
    print("KERNEL_OK")
</pallas_src>

<mosaic_0001>
module attributes {stable_mosaic.version = 11 : i64} {
  func.func @basic_block_kernel(%arg0: memref<8x128xf32, #tpu.memory_space<vmem>>, %arg1: memref<8x24xf32, #tpu.memory_space<vmem>>, %arg2: memref<8x1xf32, #tpu.memory_space<vmem>>, %arg3: memref<8x1xf32, #tpu.memory_space<vmem>>, %arg4: memref<8x1xf32, #tpu.memory_space<vmem>>, %arg5: memref<8x24xf32, #tpu.memory_space<vmem>>, %arg6: memref<8x1xf32, #tpu.memory_space<vmem>>, %arg7: memref<8x1xf32, #tpu.memory_space<vmem>>, %arg8: memref<8x1xf32, #tpu.memory_space<vmem>>, %arg9: memref<8x128xf32, #tpu.memory_space<vmem>>) attributes {dimension_semantics = [], scalar_prefetch = 0 : i64, scratch_operands = 0 : i64, tpu.core_type = #tpu.core_type<tc>} {
    %0 = tpu.iota {dimensions = array<i32: 1>} : vector<1x128xi32>
    %c16_i32 = arith.constant 16 : i32
    %c0_i32 = arith.constant 0 : i32
    %1 = arith.cmpi eq, %c16_i32, %c0_i32 : i32
    %c1_i32 = arith.constant 1 : i32
    %2 = arith.select %1, %c1_i32, %c16_i32 : i32
    %3 = vector.broadcast %2 : i32 to vector<1x128xi32>
    %4 = arith.remsi %0, %3 : vector<1x128xi32>
    %c0_i32_0 = arith.constant 0 : i32
    %5 = vector.broadcast %c0_i32_0 : i32 to vector<1x128xi32>
    %6 = arith.cmpi ne, %4, %5 : vector<1x128xi32>
    %c0_i32_1 = arith.constant 0 : i32
    %7 = vector.broadcast %c0_i32_1 : i32 to vector<1x128xi32>
    %8 = arith.cmpi slt, %4, %7 : vector<1x128xi32>
    %c0_i32_2 = arith.constant 0 : i32
    %9 = arith.cmpi slt, %2, %c0_i32_2 : i32
    %10 = vector.broadcast %9 : i1 to vector<1x128xi1>
    %11 = vector.broadcast %10 : vector<1x128xi1> to vector<1x128xi1>
    %12 = arith.xori %8, %11 : vector<1x128xi1>
    %13 = arith.andi %12, %6 : vector<1x128xi1>
    %14 = vector.broadcast %2 : i32 to vector<1x128xi32>
    %15 = arith.addi %4, %14 : vector<1x128xi32>
    %16 = arith.select %13, %15, %4 : vector<1x128xi1>, vector<1x128xi32>
    %c0_i32_3 = arith.constant 0 : i32
    %17 = vector.broadcast %c0_i32_3 : i32 to vector<1x128xi32>
    %18 = arith.cmpi ne, %16, %17 : vector<1x128xi32>
    %c15_i32 = arith.constant 15 : i32
    %19 = vector.broadcast %c15_i32 : i32 to vector<1x128xi32>
    %20 = arith.cmpi ne, %16, %19 : vector<1x128xi32>
    %c32_i32 = arith.constant 32 : i32
    %21 = vector.broadcast %c32_i32 : i32 to vector<1x128xi32>
    %22 = arith.cmpi slt, %0, %21 : vector<1x128xi32>
    %23 = arith.extui %22 : vector<1x128xi1> to vector<1x128xi32>
    %24 = arith.sitofp %23 : vector<1x128xi32> to vector<1x128xf32>
    %25 = arith.andi %18, %22 : vector<1x128xi1>
    %26 = arith.extui %25 : vector<1x128xi1> to vector<1x128xi32>
    %27 = arith.sitofp %26 : vector<1x128xi32> to vector<1x128xf32>
    %28 = arith.andi %20, %22 : vector<1x128xi1>
    %29 = arith.extui %28 : vector<1x128xi1> to vector<1x128xi32>
    %30 = arith.sitofp %29 : vector<1x128xi32> to vector<1x128xf32>
    %c0 = arith.constant 0 : index
    %c0_4 = arith.constant 0 : index
    %31 = vector.load %arg0[%c0, %c0_4] : memref<8x128xf32, #tpu.memory_space<vmem>>, vector<8x128xf32>
    %c1_i32_5 = arith.constant 1 : i32
    %32 = tpu.dynamic_rotate %31 by %c1_i32_5 dim 1 : vector<8x128xf32>, i32 -> vector<8x128xf32>
    %33 = vector.broadcast %27 : vector<1x128xf32> to vector<8x128xf32>
    %34 = arith.mulf %32, %33 : vector<8x128xf32>
    %c127_i32 = arith.constant 127 : i32
    %35 = tpu.dynamic_rotate %31 by %c127_i32 dim 1 : vector<8x128xf32>, i32 -> vector<8x128xf32>
    %36 = vector.broadcast %30 : vector<1x128xf32> to vector<8x128xf32>
    %37 = arith.mulf %35, %36 : vector<8x128xf32>
    %38 = tpu.concatenate %34, %31, %37 in 0 : vector<8x128xf32>, vector<8x128xf32>, vector<8x128xf32> -> vector<24x128xf32>
    %c0_6 = arith.constant 0 : index
    %c0_7 = arith.constant 0 : index
    %39 = vector.load %arg1[%c0_6, %c0_7] : memref<8x24xf32, #tpu.memory_space<vmem>>, vector<8x24xf32>
    %cst = arith.constant dense<0.000000e+00> : vector<8x128xf32>
    %40 = tpu.matmul %39, %38, %cst {dimension_numbers = #tpu.dot_dimension_numbers<[1], [0], [0], [1], [0, 0, 1, 1], [], []>} : vector<8x24xf32>, vector<24x128xf32>, vector<8x128xf32> -> vector<8x128xf32>
    %c0_8 = arith.constant 0 : index
    %c0_9 = arith.constant 0 : index
    %41 = vector.load %arg2[%c0_8, %c0_9] : memref<8x1xf32, #tpu.memory_space<vmem>>, vector<8x1xf32>
    %42 = vector.broadcast %41 : vector<8x1xf32> to vector<8x128xf32>
    %43 = arith.addf %40, %42 : vector<8x128xf32>
    %44 = vector.broadcast %24 : vector<1x128xf32> to vector<8x128xf32>
    %45 = arith.mulf %43, %44 : vector<8x128xf32>
    %cst_10 = arith.constant dense<0.000000e+00> : vector<8xf32>
    %46 = vector.multi_reduction <add>, %45, %cst_10 [1] : vector<8x128xf32> to vector<8xf32>
    %47 = vector.shape_cast %46 : vector<8xf32> to vector<8x1xf32>
    %48 = arith.mulf %45, %45 : vector<8x128xf32>
    %cst_11 = arith.constant dense<0.000000e+00> : vector<8xf32>
    %49 = vector.multi_reduction <add>, %48, %cst_11 [1] : vector<8x128xf32> to vector<8xf32>
    %50 = vector.shape_cast %49 : vector<8xf32> to vector<8x1xf32>
    %cst_12 = arith.constant 3.125000e-02 : f32
    %51 = vector.broadcast %cst_12 : f32 to vector<8x1xf32>
    %52 = arith.mulf %47, %51 : vector<8x1xf32>
    %cst_13 = arith.constant 3.125000e-02 : f32
    %53 = vector.broadcast %cst_13 : f32 to vector<8x1xf32>
    %54 = arith.mulf %50, %53 : vector<8x1xf32>
    %55 = arith.mulf %52, %52 : vector<8x1xf32>
    %56 = arith.subf %54, %55 : vector<8x1xf32>
    %cst_14 = arith.constant 9.99999974E-6 : f32
    %57 = vector.broadcast %cst_14 : f32 to vector<8x1xf32>
    %58 = arith.addf %56, %57 : vector<8x1xf32>
    %59 = math.rsqrt %58 : vector<8x1xf32>
    %c0_15 = arith.constant 0 : index
    %c0_16 = arith.constant 0 : index
    %60 = vector.load %arg3[%c0_15, %c0_16] : memref<8x1xf32, #tpu.memory_space<vmem>>, vector<8x1xf32>
    %61 = arith.mulf %59, %60 : vector<8x1xf32>
    %c0_17 = arith.constant 0 : index
    %c0_18 = arith.constant 0 : index
    %62 = vector.load %arg4[%c0_17, %c0_18] : memref<8x1xf32, #tpu.memory_space<vmem>>, vector<8x1xf32>
    %63 = arith.mulf %52, %61 : vector<8x1xf32>
    %64 = arith.subf %62, %63 : vector<8x1xf32>
    %65 = vector.broadcast %61 : vector<8x1xf32> to vector<8x128xf32>
    %66 = arith.mulf %43, %65 : vector<8x128xf32>
    %67 = vector.broadcast %64 : vector<8x1xf32> to vector<8x128xf32>
    %68 = arith.addf %66, %67 : vector<8x128xf32>
    %cst_19 = arith.constant 0.000000e+00 : f32
    %69 = vector.broadcast %cst_19 : f32 to vector<8x128xf32>
    %70 = arith.maximumf %68, %69 : vector<8x128xf32>
    %c1_i32_20 = arith.constant 1 : i32
    %71 = tpu.dynamic_rotate %70 by %c1_i32_20 dim 1 : vector<8x128xf32>, i32 -> vector<8x128xf32>
    %72 = vector.broadcast %27 : vector<1x128xf32> to vector<8x128xf32>
    %73 = arith.mulf %71, %72 : vector<8x128xf32>
    %c127_i32_21 = arith.constant 127 : i32
    %74 = tpu.dynamic_rotate %70 by %c127_i32_21 dim 1 : vector<8x128xf32>, i32 -> vector<8x128xf32>
    %75 = vector.broadcast %30 : vector<1x128xf32> to vector<8x128xf32>
    %76 = arith.mulf %74, %75 : vector<8x128xf32>
    %77 = tpu.concatenate %73, %70, %76 in 0 : vector<8x128xf32>, vector<8x128xf32>, vector<8x128xf32> -> vector<24x128xf32>
    %c0_22 = arith.constant 0 : index
    %c0_23 = arith.constant 0 : index
    %78 = vector.load %arg5[%c0_22, %c0_23] : memref<8x24xf32, #tpu.memory_space<vmem>>, vector<8x24xf32>
    %cst_24 = arith.constant dense<0.000000e+00> : vector<8x128xf32>
    %79 = tpu.matmul %78, %77, %cst_24 {dimension_numbers = #tpu.dot_dimension_numbers<[1], [0], [0], [1], [0, 0, 1, 1], [], []>} : vector<8x24xf32>, vector<24x128xf32>, vector<8x128xf32> -> vector<8x128xf32>
    %c0_25 = arith.constant 0 : index
    %c0_26 = arith.constant 0 : index
    %80 = vector.load %arg6[%c0_25, %c0_26] : memref<8x1xf32, #tpu.memory_space<vmem>>, vector<8x1xf32>
    %81 = vector.broadcast %80 : vector<8x1xf32> to vector<8x128xf32>
    %82 = arith.addf %79, %81 : vector<8x128xf32>
    %83 = vector.broadcast %24 : vector<1x128xf32> to vector<8x128xf32>
    %84 = arith.mulf %82, %83 : vector<8x128xf32>
    %cst_27 = arith.constant dense<0.000000e+00> : vector<8xf32>
    %85 = vector.multi_reduction <add>, %84, %cst_27 [1] : vector<8x128xf32> to vector<8xf32>
    %86 = vector.shape_cast %85 : vector<8xf32> to vector<8x1xf32>
    %87 = arith.mulf %84, %84 : vector<8x128xf32>
    %cst_28 = arith.constant dense<0.000000e+00> : vector<8xf32>
    %88 = vector.multi_reduction <add>, %87, %cst_28 [1] : vector<8x128xf32> to vector<8xf32>
    %89 = vector.shape_cast %88 : vector<8xf32> to vector<8x1xf32>
    %cst_29 = arith.constant 3.125000e-02 : f32
    %90 = vector.broadcast %cst_29 : f32 to vector<8x1xf32>
    %91 = arith.mulf %86, %90 : vector<8x1xf32>
    %cst_30 = arith.constant 3.125000e-02 : f32
    %92 = vector.broadcast %cst_30 : f32 to vector<8x1xf32>
    %93 = arith.mulf %89, %92 : vector<8x1xf32>
    %94 = arith.mulf %91, %91 : vector<8x1xf32>
    %95 = arith.subf %93, %94 : vector<8x1xf32>
    %cst_31 = arith.constant 9.99999974E-6 : f32
    %96 = vector.broadcast %cst_31 : f32 to vector<8x1xf32>
    %97 = arith.addf %95, %96 : vector<8x1xf32>
    %98 = math.rsqrt %97 : vector<8x1xf32>
    %c0_32 = arith.constant 0 : index
    %c0_33 = arith.constant 0 : index
    %99 = vector.load %arg7[%c0_32, %c0_33] : memref<8x1xf32, #tpu.memory_space<vmem>>, vector<8x1xf32>
    %100 = arith.mulf %98, %99 : vector<8x1xf32>
    %c0_34 = arith.constant 0 : index
    %c0_35 = arith.constant 0 : index
    %101 = vector.load %arg8[%c0_34, %c0_35] : memref<8x1xf32, #tpu.memory_space<vmem>>, vector<8x1xf32>
    %102 = arith.mulf %91, %100 : vector<8x1xf32>
    %103 = arith.subf %101, %102 : vector<8x1xf32>
    %104 = vector.broadcast %100 : vector<8x1xf32> to vector<8x128xf32>
    %105 = arith.mulf %82, %104 : vector<8x128xf32>
    %106 = vector.broadcast %103 : vector<8x1xf32> to vector<8x128xf32>
    %107 = arith.addf %105, %106 : vector<8x128xf32>
    %108 = arith.addf %107, %31 : vector<8x128xf32>
    %cst_36 = arith.constant 0.000000e+00 : f32
    %109 = vector.broadcast %cst_36 : f32 to vector<8x128xf32>
    %110 = arith.maximumf %108, %109 : vector<8x128xf32>
    %c0_37 = arith.constant 0 : index
    %c0_38 = arith.constant 0 : index
    %111 = vector.load %arg9[%c0_37, %c0_38] : memref<8x128xf32, #tpu.memory_space<vmem>>, vector<8x128xf32>
    tpu.vector_store %arg9[%c0_37, %c0_38], %110 {strides = array<i32>} : memref<8x128xf32, #tpu.memory_space<vmem>>, vector<8x128xf32>,
    return
  }
}

</mosaic_0001>

<bundles_post_ra>
// kernel: tpu_custom_call.1
= control target key start
LH: loop header
LB: loop body
LE: loop exit
PB: predicated region body
PF: predicated region fallthrough
CT: control target
= control target key end

     0   :  { %14 = vsyncpa [#allocation3], 0  ;;  %s916_s0 = inlined_call_operand.hbm [shape: f32[8,128], index: 0, kind: input, shape index: {}]   ;;  %s917_s1 = inlined_call_operand.hbm [shape: f32[8,24], index: 1, kind: input, shape index: {}]   ;;  %s918_s2 = inlined_call_operand.hbm [shape: f32[8,1], index: 2, kind: input, shape index: {}]   ;;  %s919_s3 = inlined_call_operand.hbm [shape: f32[8,1], index: 3, kind: input, shape index: {}]   ;;  %s920_s4 = inlined_call_operand.hbm [shape: f32[8,1], index: 4, kind: input, shape index: {}]   ;;  %s921_s5 = inlined_call_operand.hbm [shape: f32[8,24], index: 5, kind: input, shape index: {}]   ;;  %s922_s6 = inlined_call_operand.hbm [shape: f32[8,1], index: 6, kind: input, shape index: {}]   ;;  %s923_s7 = inlined_call_operand.hbm [shape: f32[8,1], index: 7, kind: input, shape index: {}]   ;;  %s924_s8 = inlined_call_operand.hbm [shape: f32[8,1], index: 8, kind: input, shape index: {}]   ;;  %s925_s9 = inlined_call_operand.hbm [shape: f32[8,128], index: 9, kind: output, shape index: {}]  }
   0x1   :  { %15 = vsyncpa [#allocation6], 0 }
   0x2   :  { %16 = vsyncpa [#allocation9], 0 }
   0x3   :  { %17 = vsyncpa [#allocation12], 0 }
   0x4   :  { %18 = vsyncpa [#allocation15], 0 }
   0x5   :  { %19 = vsyncpa [#allocation4], 0  ;;  %s708_s30 = smov [#allocation5]   ;;  %s709_s11 = smov [#allocation8]  }
   0x6   :  { %s36_s10 = sshll.u32 %s708_s30, 4  ;;  %s56_s12 = sshll.u32 %s709_s11, 4  ;;  %s37_s10 = int_to_ptr.vmem [resolvable:$true] %s36_s10  ;;  %s57_s12 = int_to_ptr.vmem [resolvable:$true] %s56_s12 }
   0x7   :  { %s476_s15 = scalar_lea.hbm %s917_s1, 128 }
   0x8   :  { %p477_p0 = scmp.ne.s32.totalorder %s917_s1, %s476_s15  ;;  %p480_p1 = scmp.lt.u32.totalorder %s476_s15, %s917_s1 }
   0xa   :  { %p482_p2 = pnand %p480_p1, %p477_p0 }
   0xc   :  { %485 = shalt.err (!%p482_p2)
}
   0xd   :  { %s486_s20 = scalar_lea.vmem %s37_s10, 128  ;;  %p491_p4 = scmp.lt.s32.totalorder %s37_s10, %s37_s10 }
   0xe   :  { %p487_p3 = scmp.ne.s32.totalorder %s37_s10, %s486_s20  ;;  %p492_p5 = scmp.lt.s32.totalorder %s486_s20, %s486_s20 }
  0x10   :  { %p493_p6 = por %p492_p5, %p491_p4 }
  0x12   :  { %p494_p7 = pnand %p493_p6, %p487_p3 }
  0x14   :  { %497 = shalt.err (!%p494_p7)
}
  0x15   :  { %39 = dma.hbm_to_vmem [thread:$0]  %s917_s1, 128, %s37_s10, [#allocation6]  }
  0x16   :  { %s498_s25 = scalar_lea.hbm %s919_s3, 128 }
  0x17   :  { %p499_p8 = scmp.ne.s32.totalorder %s919_s3, %s498_s25  ;;  %p502_p9 = scmp.lt.u32.totalorder %s498_s25, %s919_s3 }
  0x19   :  { %p504_p10 = pnand %p502_p9, %p499_p8 }
  0x1b   :  { %507 = shalt.err (!%p504_p10)
}
  0x1c   :  { %s508_s30 = scalar_lea.vmem %s57_s12, 128  ;;  %p513_p12 = scmp.lt.s32.totalorder %s57_s12, %s57_s12 }
  0x1d   :  { %p509_p11 = scmp.ne.s32.totalorder %s57_s12, %s508_s30  ;;  %p514_p13 = scmp.lt.s32.totalorder %s508_s30, %s508_s30 }
  0x1f   :  { %p515_p0 = por %p514_p13, %p513_p12 }
  0x21   :  { %p516_p1 = pnand %p515_p0, %p509_p11 }
  0x23   :  { %519 = shalt.err (!%p516_p1)
}
  0x24   :  { %59 = dma.hbm_to_vmem [thread:$0]  %s919_s3, 128, %s57_s12, [#allocation9]  }
  0x25   :  { %s710_s11 = smov [#allocation11]   ;;  %s711_s14 = smov [#allocation14]  }
  0x26   :  { %s76_s13 = sshll.u32 %s710_s11, 4  ;;  %s96_s15 = sshll.u32 %s711_s14, 4  ;;  %s77_s13 = int_to_ptr.vmem [resolvable:$true] %s76_s13  ;;  %s97_s15 = int_to_ptr.vmem [resolvable:$true] %s96_s15 }
  0x27   :  { %s520_s18 = scalar_lea.hbm %s921_s5, 128 }
  0x28   :  { %p521_p2 = scmp.ne.s32.totalorder %s921_s5, %s520_s18  ;;  %p524_p3 = scmp.lt.u32.totalorder %s520_s18, %s921_s5 }
  0x2a   :  { %p526_p4 = pnand %p524_p3, %p521_p2 }
  0x2c   :  { %529 = shalt.err (!%p526_p4)
}
  0x2d   :  { %s530_s3 = scalar_lea.vmem %s77_s13, 128  ;;  %p535_p6 = scmp.lt.s32.totalorder %s77_s13, %s77_s13 }
  0x2e   :  { %p531_p5 = scmp.ne.s32.totalorder %s77_s13, %s530_s3  ;;  %p536_p7 = scmp.lt.s32.totalorder %s530_s3, %s530_s3 }
  0x30   :  { %p537_p8 = por %p536_p7, %p535_p6 }
  0x32   :  { %p538_p9 = pnand %p537_p8, %p531_p5 }
  0x34   :  { %541 = shalt.err (!%p538_p9)
}
  0x35   :  { %79 = dma.hbm_to_vmem [thread:$0]  %s921_s5, 128, %s77_s13, [#allocation12]  }
  0x36   :  { %s542_s26 = scalar_lea.hbm %s923_s7, 128 }
  0x37   :  { %p543_p10 = scmp.ne.s32.totalorder %s923_s7, %s542_s26  ;;  %p546_p11 = scmp.lt.u32.totalorder %s542_s26, %s923_s7 }
  0x39   :  { %p548_p12 = pnand %p546_p11, %p543_p10 }
  0x3b   :  { %551 = shalt.err (!%p548_p12)
}
  0x3c   :  { %s552_s1 = scalar_lea.vmem %s97_s15, 128  ;;  %p557_p0 = scmp.lt.s32.totalorder %s97_s15, %s97_s15 }
  0x3d   :  { %p553_p13 = scmp.ne.s32.totalorder %s97_s15, %s552_s1  ;;  %p558_p1 = scmp.lt.s32.totalorder %s552_s1, %s552_s1 }
  0x3f   :  { %p559_p2 = por %p558_p1, %p557_p0 }
  0x41   :  { %p560_p3 = pnand %p559_p2, %p553_p13 }
  0x43   :  { %563 = shalt.err (!%p560_p3)
}
  0x44   :  { %99 = dma.hbm_to_vmem [thread:$0]  %s923_s7, 128, %s97_s15, [#allocation15]  }
  0x45   :  { %s712_s11 = smov [#allocation2]   ;;  %s713_s14 = smov [#allocation7]  }
  0x46   :  { %s26_s13 = sshll.u32 %s712_s11, 4  ;;  %s46_s16 = sshll.u32 %s713_s14, 4  ;;  %s27_s13 = int_to_ptr.vmem [resolvable:$true] %s26_s13  ;;  %s47_s16 = int_to_ptr.vmem [resolvable:$true] %s46_s16 }
  0x47   :  { %s564_s19 = scalar_lea.hbm %s916_s0, 128 }
  0x48   :  { %p565_p4 = scmp.ne.s32.totalorder %s916_s0, %s564_s19  ;;  %p568_p5 = scmp.lt.u32.totalorder %s564_s19, %s916_s0 }
  0x4a   :  { %p570_p6 = pnand %p568_p5, %p565_p4 }
  0x4c   :  { %573 = shalt.err (!%p570_p6)
}
  0x4d   :  { %s574_s7 = scalar_lea.vmem %s27_s13, 128  ;;  %p579_p8 = scmp.lt.s32.totalorder %s27_s13, %s27_s13 }
  0x4e   :  { %p575_p7 = scmp.ne.s32.totalorder %s27_s13, %s574_s7  ;;  %p580_p9 = scmp.lt.s32.totalorder %s574_s7, %s574_s7 }
  0x50   :  { %p581_p10 = por %p580_p9, %p579_p8 }
  0x52   :  { %p582_p11 = pnand %p581_p10, %p575_p7 }
  0x54   :  { %585 = shalt.err (!%p582_p11)
}
  0x55   :  { %29 = dma.hbm_to_vmem [thread:$0]  %s916_s0, 128, %s27_s13, [#allocation3]  }
  0x56   :  { %s586_s25 = scalar_lea.hbm %s918_s2, 128 }
  0x57   :  { %p587_p12 = scmp.ne.s32.totalorder %s918_s2, %s586_s25  ;;  %p590_p13 = scmp.lt.u32.totalorder %s586_s25, %s918_s2 }
  0x59   :  { %p592_p0 = pnand %p590_p13, %p587_p12 }
  0x5b   :  { %595 = shalt.err (!%p592_p0)
}
  0x5c   :  { %s596_s30 = scalar_lea.vmem %s47_s16, 128  ;;  %p601_p2 = scmp.lt.s32.totalorder %s47_s16, %s47_s16 }
  0x5d   :  { %p597_p1 = scmp.ne.s32.totalorder %s47_s16, %s596_s30  ;;  %p602_p3 = scmp.lt.s32.totalorder %s596_s30, %s596_s30 }
  0x5f   :  { %p603_p4 = por %p602_p3, %p601_p2 }
  0x61   :  { %p604_p5 = pnand %p603_p4, %p597_p1 }
  0x63   :  { %607 = shalt.err (!%p604_p5)
}
  0x64   :  { %49 = dma.hbm_to_vmem [thread:$0]  %s918_s2, 128, %s47_s16, [#allocation6]  }
  0x65   :  { %s714_s5 = smov [#allocation10]   ;;  %s715_s11 = smov [#allocation13]  }
  0x66   :  { %s66_s10 = sshll.u32 %s714_s5, 4  ;;  %s86_s13 = sshll.u32 %s715_s11, 4  ;;  %s67_s10 = int_to_ptr.vmem [resolvable:$true] %s66_s10  ;;  %s87_s13 = int_to_ptr.vmem [resolvable:$true] %s86_s13 }
  0x67   :  { %s608_s18 = scalar_lea.hbm %s920_s4, 128 }
  0x68   :  { %p609_p6 = scmp.ne.s32.totalorder %s920_s4, %s608_s18  ;;  %p612_p7 = scmp.lt.u32.totalorder %s608_s18, %s920_s4 }
  0x6a   :  { %p614_p8 = pnand %p612_p7, %p609_p6 }
  0x6c   :  { %617 = shalt.err (!%p614_p8)
}
  0x6d   :  { %s618_s2 = scalar_lea.vmem %s67_s10, 128  ;;  %p623_p10 = scmp.lt.s32.totalorder %s67_s10, %s67_s10 }
  0x6e   :  { %p619_p9 = scmp.ne.s32.totalorder %s67_s10, %s618_s2  ;;  %p624_p11 = scmp.lt.s32.totalorder %s618_s2, %s618_s2 }
  0x70   :  { %p625_p12 = por %p624_p11, %p623_p10 }
  0x72   :  { %p626_p13 = pnand %p625_p12, %p619_p9 }
  0x74   :  { %629 = shalt.err (!%p626_p13)
}
  0x75   :  { %69 = dma.hbm_to_vmem [thread:$0]  %s920_s4, 128, %s67_s10, [#allocation9]  }
  0x76   :  { %s630_s12 = scalar_lea.hbm %s922_s6, 128 }
  0x77   :  { %p631_p0 = scmp.ne.s32.totalorder %s922_s6, %s630_s12  ;;  %p634_p1 = scmp.lt.u32.totalorder %s630_s12, %s922_s6 }
  0x79   :  { %p636_p2 = pnand %p634_p1, %p631_p0 }
  0x7b   :  { %639 = shalt.err (!%p636_p2)
}
  0x7c   :  { %s640_s27 = scalar_lea.vmem %s87_s13, 128  ;;  %p645_p4 = scmp.lt.s32.totalorder %s87_s13, %s87_s13 }
  0x7d   :  { %p641_p3 = scmp.ne.s32.totalorder %s87_s13, %s640_s27  ;;  %p646_p5 = scmp.lt.s32.totalorder %s640_s27, %s640_s27 }
  0x7f   :  { %p647_p6 = por %p646_p5, %p645_p4 }
  0x81   :  { %p648_p7 = pnand %p647_p6, %p641_p3 }
  0x83   :  { %651 = shalt.err (!%p648_p7)
}
  0x84   :  { %89 = dma.hbm_to_vmem [thread:$0]  %s922_s6, 128, %s87_s13, [#allocation12]  }
  0x85   :  { %s716_s29 = smov [#allocation16]   ;;  %s652_s5 = scalar_lea.hbm %s924_s8, 128 }
  0x86   :  { %s106_s30 = sshll.u32 %s716_s29, 4  ;;  %p653_p8 = scmp.ne.s32.totalorder %s924_s8, %s652_s5  ;;  %s107_s30 = int_to_ptr.vmem [resolvable:$true] %s106_s30 }
  0x87   :  { %p656_p9 = scmp.lt.u32.totalorder %s652_s5, %s924_s8 }
  0x89   :  { %p658_p10 = pnand %p656_p9, %p653_p8 }
  0x8b   :  { %661 = shalt.err (!%p658_p10)
}
  0x8c   :  { %s662_s18 = scalar_lea.vmem %s107_s30, 128  ;;  %p667_p12 = scmp.lt.s32.totalorder %s107_s30, %s107_s30 }
  0x8d   :  { %p663_p11 = scmp.ne.s32.totalorder %s107_s30, %s662_s18  ;;  %p668_p13 = scmp.lt.s32.totalorder %s662_s18, %s662_s18 }
  0x8f   :  { %p669_p0 = por %p668_p13, %p667_p12 }
  0x91   :  { %p670_p1 = pnand %p669_p0, %p663_p11 }
  0x93   :  { %673 = shalt.err (!%p670_p1)
}
  0x94   :  { %109 = dma.hbm_to_vmem [thread:$0]  %s924_s8, 128, %s107_s30, [#allocation15]  }
  0x95   :  { %696 = dma.done.wait [#allocation3], 128  }
  0x96   :  { %697 = vsyncadd [#allocation3], 4294967168 }
  0x97   :  { %698 = dma.done.wait [#allocation6], 256  }
  0x98   :  { %699 = vsyncadd [#allocation6], 4294967040 }
  0x99   :  { %700 = dma.done.wait [#allocation9], 256  }
  0x9a   :  { %701 = vsyncadd [#allocation9], 4294967040 }
  0x9b   :  { %702 = dma.done.wait [#allocation12], 256  }
  0x9c   :  { %703 = vsyncadd [#allocation12], 4294967040 }
  0x9d   :  { %704 = dma.done.wait [#allocation15], 256  }
  0x9e   :  { %705 = vsyncadd [#allocation15], 4294967040  ;;  %v717_v0 = vmov 0.0|0.0   ;;  %vm718_vm0 = vmmov 0   ;;  %v719_v1 = vmov 0.0   ;;  %v720_v2 = vmov 0  }
  0x9f   :  { %448 = vmatprep.subr.bf16.mxu0 %v717_v0  ;;  %451 = vmatprep.subr.bf16.mxu1 %v717_v0  ;;  %v884_v3 = vld [vmem:[#allocation2] sm:$0xff]  ;;  %s721_s8 = smov 1   ;;  %v170_v4 = vld [vmem:[#allocation7] sm:$0xff]  ;;  %s722_s19 = smov 127   ;;  %v137_v5 = vlaneseq  ;;  %v169_v15 = vld [vmem:[#allocation5] sm:$0xff]  ;;  %vm176_vm6 = vcmask 195584  }
  0xa0   :  { %436 = vmatprep.mubr.msk.f32.mxu0 %vm718_vm0, %v719_v1  ;;  %445 = vmatprep.mubr.msk.f32.mxu1 %vm718_vm0, %v719_v1  ;;  %v262_v30 = vld [vmem:[#allocation8] sm:$0xff]  ;;  %v264_v33 = vld [vmem:[#allocation10] sm:$0xff]  ;;  %v287_v41 = vld [vmem:[#allocation13] sm:$0xff]  ;;  %s723_s20 = smov [#allocation17]  }
  0xa1   :  { %470 = vset.pattern.permute.xlu1 %v720_v2  ;;  %471 = vset.pattern.permute.xlu0 %v720_v2  ;;  %v138_v6 = vand.u32 127, %v137_v5  ;;  %v286_v47 = vld [vmem:[#allocation11] sm:$0xff]  ;;  %v378_v61 = vld [vmem:[#allocation14] sm:$0xff]  ;;  %v380_v0 = vld [vmem:[#allocation16] sm:$0xff]  ;;  %s404_s21 = sshll.u32 %s723_s20, 4  ;;  %s405_s21 = int_to_ptr.vmem [resolvable:$true] %s404_s21 }
  0xa2   :  { %163 = vrot.lane.b32.xlu0 %v884_v3, %s721_s8  ;;  %173 = vperm.xlu1 %470, %v170_v4   ;;  %s674_s22 = scalar_lea.vmem %s405_s21, 128  ;;  %p679_p3 = scmp.lt.s32.totalorder %s405_s21, %s405_s21 }
  0xa3   :  { %v143_v7 = vand.u32 15, %v138_v6  ;;  %vm153_vm2 = vcmp.lt.s32.totalorder %v138_v6, 32  ;;  %p675_p2 = scmp.ne.s32.totalorder %s405_s21, %s674_s22  ;;  %p680_p4 = scmp.lt.s32.totalorder %s674_s22, %s674_s22 }
  0xa4   :  { %v417_v18 = vsel %vm153_vm2, 1.0, %v719_v1 }
  0xa5   :  { %vm151_vm1 = vcmp.ne.s32.totalorder %v143_v7, 0  ;;  %vm152_vm4 = vcmp.ne.s32.totalorder %v143_v7, 15  ;;  %p681_p5 = por %p680_p4, %p679_p3 }
  0xa6   :  { %166 = vrot.lane.b32.xlu0 %v884_v3, %s722_s19  ;;  %vm156_vm3 = vmand %vm151_vm1, %vm153_vm2 }
  0xa7   :  { %v418_v8 = vsel %vm156_vm3, 1.0, %v719_v1  ;;  %vm159_vm5 = vmand %vm152_vm4, %vm153_vm2  ;;  %p682_p6 = pnand %p681_p5, %p675_p2 }
  0xa8   :  { %v419_v11 = vsel %vm159_vm5, 1.0, %v719_v1 }
 0x114   :  { %v164_v9 = vpop.permute.xlu0 %163 }
 0x115   :  { %v165_v10 = vmul.f32 %v418_v8, %v164_v9 }
 0x117   :  { %v449_v12 = vpack.c.bf16 %v884_v3, %v165_v10 }
 0x118   :  { %v167_v13 = vpop.permute.xlu0 %166 }
 0x119   :  { %450 = vmatpush3.bf16.msra.mxu0 %v449_v12  ;;  %v168_v14 = vmul.f32 %v419_v11, %v167_v13 }
 0x11a   :  { %434 = vmatprep.subr.mxu0 %v719_v1 }
 0x11d   :  { %435 = vmatpush3.msra.mxu0 %v168_v14 }
 0x11e   :  { %437 = vmatmul.mubr.msk.f32.vlgmr.msra.gmra.mrb[0].mxu0 %vm176_vm6, %v169_v15 }
 0x121   :  { %v174_v16 = vpop.permute.xlu1 %173 }
 0x1f1   :  { %v246_v17 = vpop.f32.mrb[0].mxu0 }
 0x1f2   :  { %v247_v19 = vadd.f32 %v246_v17, %v174_v16  ;;  %v438_v20 = vpop.f32.mrb[1].mxu0 }
 0x1f4   :  { %v250_v21 = vmul.f32 %v417_v18, %v247_v19 }
 0x1f6   :  { %251 = vadd.xlane.f32.xlu1 %v250_v21  ;;  %v253_v22 = vmul.f32 %v250_v21, %v250_v21 }
 0x1f8   :  { %254 = vadd.xlane.f32.xlu0 %v253_v22 }
 0x283   :  { %v252_v23 = vpop.xlane.xlu1 %251 }
 0x284   :  { %v256_v24 = vmul.f32 0.03125, %v252_v23 }
 0x285   :  { %v255_v25 = vpop.xlane.xlu0 %254 }
 0x286   :  { %v258_v26 = vmul.f32 %v256_v24, %v256_v24  ;;  %v257_v27 = vmul.f32 0.03125, %v255_v25 }
 0x288   :  { %v259_v28 = vsub.f32 %v257_v27, %v258_v26 }
 0x28a   :  { %v260_v29 = vadd.f32 1e-05, %v259_v28 }
 0x28c   :  { %472 = vrsqrt.f32 %v260_v29 }
 0x296   :  { %v473_v31 = vpop.eup %472 }
 0x297   :  { %v263_v32 = vmul.f32 %v473_v31, %v262_v30 }
 0x299   :  { %269 = vperm.xlu0 %471, %v263_v32   ;;  %v265_v34 = vmul.f32 %v263_v32, %v256_v24 }
 0x29b   :  { %v266_v35 = vsub.f32 %v264_v33, %v265_v34 }
 0x29d   :  { %275 = vperm.xlu1 %470, %v266_v35  }
 0x318   :  { %v270_v36 = vpop.permute.xlu0 %269 }
 0x319   :  { %v272_v37 = vmul.f32 %v270_v36, %v247_v19 }
 0x31c   :  { %v276_v38 = vpop.permute.xlu1 %275 }
 0x31d   :  { %v278_v39 = vadd.f32 %v276_v38, %v272_v37 }
 0x31f   :  { %v279_v40 = vmax.f32 %v278_v39, 0.0 }
 0x321   :  { %280 = vrot.lane.b32.xlu1 %v279_v40, %s721_s8 }
 0x325   :  { %283 = vrot.lane.b32.xlu1 %v279_v40, %s722_s19 }
 0x329   :  { %290 = vperm.xlu1 %470, %v287_v41  }
 0x393   :  { %v281_v42 = vpop.permute.xlu1 %280 }
 0x394   :  { %v282_v43 = vmul.f32 %v418_v8, %v281_v42 }
 0x396   :  { %v452_v44 = vpack.c.bf16 %v279_v40, %v282_v43 }
 0x397   :  { %v284_v45 = vpop.permute.xlu1 %283 }
 0x398   :  { %453 = vmatpush3.bf16.msra.mxu1 %v452_v44  ;;  %v285_v46 = vmul.f32 %v419_v11, %v284_v45 }
 0x399   :  { %443 = vmatprep.subr.mxu1 %v719_v1 }
 0x39c   :  { %444 = vmatpush3.msra.mxu1 %v285_v46 }
 0x39d   :  { %446 = vmatmul.mubr.msk.f32.vlgmr.msra.gmra.mrb[0].mxu1 %vm176_vm6, %v286_v47 }
 0x3a8   :  { %v291_v48 = vpop.permute.xlu1 %290 }
 0x470   :  { %v362_v49 = vpop.f32.mrb[0].mxu1 }
 0x471   :  { %v363_v50 = vadd.f32 %v362_v49, %v291_v48  ;;  %v447_v51 = vpop.f32.mrb[1].mxu1 }
 0x473   :  { %v366_v52 = vmul.f32 %v417_v18, %v363_v50 }
 0x475   :  { %367 = vadd.xlane.f32.xlu1 %v366_v52  ;;  %v369_v53 = vmul.f32 %v366_v52, %v366_v52 }
 0x477   :  { %370 = vadd.xlane.f32.xlu0 %v369_v53 }
 0x502   :  { %v368_v54 = vpop.xlane.xlu1 %367 }
 0x503   :  { %v372_v55 = vmul.f32 0.03125, %v368_v54 }
 0x504   :  { %v371_v56 = vpop.xlane.xlu0 %370 }
 0x505   :  { %v374_v57 = vmul.f32 %v372_v55, %v372_v55  ;;  %v373_v58 = vmul.f32 0.03125, %v371_v56 }
 0x507   :  { %v375_v59 = vsub.f32 %v373_v58, %v374_v57 }
 0x509   :  { %v376_v60 = vadd.f32 1e-05, %v375_v59 }
 0x50b   :  { %474 = vrsqrt.f32 %v376_v60 }
 0x515   :  { %v475_v62 = vpop.eup %474 }
 0x516   :  { %v379_v63 = vmul.f32 %v475_v62, %v378_v61 }
 0x518   :  { %385 = vperm.xlu1 %470, %v379_v63   ;;  %v381_v1 = vmul.f32 %v379_v63, %v372_v55 }
 0x51a   :  { %v382_v2 = vsub.f32 %v380_v0, %v381_v1 }
 0x51c   :  { %391 = vperm.xlu0 %471, %v382_v2  }
 0x597   :  { %v386_v4 = vpop.permute.xlu1 %385 }
 0x598   :  { %v388_v5 = vmul.f32 %v386_v4, %v363_v50 }
 0x59b   :  { %v392_v6 = vpop.permute.xlu0 %391 }
 0x59c   :  { %v394_v7 = vadd.f32 %v392_v6, %v388_v5 }
 0x59e   :  { %v395_v8 = vadd.f32 %v394_v7, %v884_v3 }
 0x5a0   :  { %v396_v9 = vmax.f32 %v395_v8, 0.0 }
 0x5a2   :  { %397 = vst [vmem:[#allocation17] sm:$0xff] %v396_v9 }
 0x5a3   :  { %685 = shalt.err (!%p682_p6)
}
 0x5a4   :  { %s686_s3 = scalar_lea.hbm %s925_s9, 128 }
 0x5a5   :  { %p687_p7 = scmp.ne.s32.totalorder %s925_s9, %s686_s3  ;;  %p690_p8 = scmp.lt.u32.totalorder %s686_s3, %s925_s9 }
 0x5a7   :  { %p692_p9 = pnand %p690_p8, %p687_p7 }
 0x5a9   :  { %695 = shalt.err (!%p692_p9)
}
 0x5aa   :  { %407 = dma.vmem_to_hbm [thread:$0]  %s405_s21, 128, %s925_s9, [#allocation4]  }
 0x5ab   :  { %706 = dma.done.wait [#allocation4], 128  }
 0x5ac   :  { %707 = vsyncadd [#allocation4], 4294967168 }
 0x5ad   :  { %411 = vsyncpa [#allocation3], 1 }
 0x5ae   :  { %412 = vsyncpa [#allocation6], 1 }
 0x5af   :  { %413 = vsyncpa [#allocation9], 1 }
 0x5b0   :  { %414 = vsyncpa [#allocation12], 1 }
 0x5b1   :  { %415 = vsyncpa [#allocation15], 1 }
 0x5b2   :  { %416 = vsyncpa [#allocation4], 1 }

</bundles_post_ra>
